<compile_context>
chip_gen: v7x
topology: tpu7x:2x2x1
jax: 0.10.0
libtpu: 0.0.40
codegen_flags: <defaults>
</compile_context>

<pallas_src>
from functools import partial

import jax
import jax.numpy as jnp
import numpy as np
from jax.experimental import pallas as pl
from jax.experimental.pallas import tpu as pltpu

INPUT_DIM = 28
HIDDEN_DIM = 100
OUTPUT_DIM = 10
HID_PAD = 128   # hidden dim padded to full lane width
OUT_PAD = 128   # output dim padded to full lane width (lane-dense store)


def rnn_kernel(x_ref, wih_ref, whh_ref, brnn_ref, wfc_ref, bfc_ref,
               out_ref, u_ref, *, seq_len, batch):
    # ---- Hoisted input projection: one (T*B, 28) @ (28, 128) MXU pass, bias
    # folded in once.  Result parked in VMEM scratch for the recurrence.
    u = (jnp.dot(x_ref[...], wih_ref[...], preferred_element_type=jnp.float32)
         + brnn_ref[...])                                  # (T*B, HID_PAD)
    u_ref[...] = u

    # ---- Serial recurrence: h = relu(U[t] + h @ W_hh^T), fully unrolled.
    whh = whh_ref[...]
    h0 = jnp.zeros((batch, HID_PAD), jnp.float32)

    def step(t, h):
        row = pl.multiple_of(t * batch, batch)
        u_t = u_ref[pl.ds(row, batch), :]                  # (B, HID_PAD)
        return jnp.maximum(
            u_t + jnp.dot(h, whh, preferred_element_type=jnp.float32), 0.0)

    h_last = jax.lax.fori_loop(0, seq_len, step, h0, unroll=True)

    # ---- FC head on the last hidden state (lane-dense padded output).
    out_ref[...] = (jnp.dot(h_last, wfc_ref[...],
                            preferred_element_type=jnp.float32)
                    + bfc_ref[...]).astype(out_ref.dtype)


def prepare_params(w_ih, w_hh, b_ih, b_hh, w_fc, b_fc):
    """One-time host-side layout prep: pre-transpose + zero-pad to 128 lanes.

    PyTorch layouts in:  w_ih [H, IN], w_hh [H, H], b_* [H], w_fc [OUT, H],
    b_fc [OUT].  Outputs are matmul-ready [contract, out_lanes] blocks.
    """
    wih_p = jnp.zeros((INPUT_DIM, HID_PAD), jnp.float32).at[:, :HIDDEN_DIM].set(w_ih.T)
    whh_p = jnp.zeros((HID_PAD, HID_PAD), jnp.float32).at[:HIDDEN_DIM, :HIDDEN_DIM].set(w_hh.T)
    brnn_p = jnp.zeros((1, HID_PAD), jnp.float32).at[0, :HIDDEN_DIM].set(b_ih + b_hh)
    wfc_p = jnp.zeros((HID_PAD, OUT_PAD), jnp.float32).at[:HIDDEN_DIM, :OUTPUT_DIM].set(w_fc.T)
    bfc_p = jnp.zeros((1, OUT_PAD), jnp.float32).at[0, :OUTPUT_DIM].set(b_fc)
    return wih_p, whh_p, brnn_p, wfc_p, bfc_p


@jax.jit
def rnn_forward(x, wih_p, whh_p, brnn_p, wfc_p, bfc_p):
    """x: [B, T, INPUT_DIM] (batch_first=True).  Returns [B, OUTPUT_DIM]."""
    B, T, _ = x.shape
    # Time-major then flattened to (T*B, IN): the per-step row block t*B:(t+1)*B
    # is exactly timestep t's batch; flattening here keeps the kernel reshape-free.
    x_flat = jnp.transpose(x, (1, 0, 2)).reshape(T * B, INPUT_DIM)

    out_padded = pl.pallas_call(
        partial(rnn_kernel, seq_len=T, batch=B),
        out_shape=jax.ShapeDtypeStruct((B, OUT_PAD), jnp.float32),
        # No grid: single invocation, every operand is one whole resident VMEM block.
        in_specs=[
            pl.BlockSpec((T * B, INPUT_DIM), lambda: (0, 0)),   # x (time-major, flat)
            pl.BlockSpec((INPUT_DIM, HID_PAD), lambda: (0, 0)),  # W_ih^T (padded)
            pl.BlockSpec((HID_PAD, HID_PAD), lambda: (0, 0)),    # W_hh^T (padded)
            pl.BlockSpec((1, HID_PAD), lambda: (0, 0)),          # b_ih + b_hh (padded)
            pl.BlockSpec((HID_PAD, OUT_PAD), lambda: (0, 0)),    # W_fc^T (padded)
            pl.BlockSpec((1, OUT_PAD), lambda: (0, 0)),          # b_fc (padded)
        ],
        out_specs=pl.BlockSpec((B, OUT_PAD), lambda: (0, 0)),
        scratch_shapes=[pltpu.VMEM((T * B, HID_PAD), jnp.float32)],  # hoisted U
    )(x_flat, wih_p, whh_p, brnn_p, wfc_p, bfc_p)

    return out_padded[:, :OUTPUT_DIM]


if __name__ == "__main__":
    key = jax.random.PRNGKey(0)
    kx, k1, k2, k3, k4, k5, k6 = jax.random.split(key, 7)

    batch, seq_len = 8, 8
    x = jax.random.normal(kx, (batch, seq_len, INPUT_DIM), dtype=jnp.float32)

    def uinit(k, shape, fan):
        b = 1.0 / jnp.sqrt(jnp.float32(fan))
        return jax.random.uniform(k, shape, jnp.float32, minval=-b, maxval=b)

    # nn.RNN / nn.Linear parameters in PyTorch layout, uniform(-1/sqrt(H), 1/sqrt(H))
    w_ih = uinit(k1, (HIDDEN_DIM, INPUT_DIM), HIDDEN_DIM)
    w_hh = uinit(k2, (HIDDEN_DIM, HIDDEN_DIM), HIDDEN_DIM)
    b_ih = uinit(k3, (HIDDEN_DIM,), HIDDEN_DIM)
    b_hh = uinit(k4, (HIDDEN_DIM,), HIDDEN_DIM)
    w_fc = uinit(k5, (OUTPUT_DIM, HIDDEN_DIM), HIDDEN_DIM)
    b_fc = uinit(k6, (OUTPUT_DIM,), HIDDEN_DIM)

    params = prepare_params(w_ih, w_hh, b_ih, b_hh, w_fc, b_fc)   # done once
    y = rnn_forward(x, *params)
    jax.block_until_ready(y)

    # Reference: exact float64 numpy recurrence (RNNModel.forward semantics)
    xn = np.asarray(x, dtype=np.float64)
    wih_n, whh_n = np.asarray(w_ih, np.float64), np.asarray(w_hh, np.float64)
    bih_n, bhh_n = np.asarray(b_ih, np.float64), np.asarray(b_hh, np.float64)
    wfc_n, bfc_n = np.asarray(w_fc, np.float64), np.asarray(b_fc, np.float64)
    h = np.zeros((batch, HIDDEN_DIM), dtype=np.float64)
    for t in range(seq_len):
        h = np.maximum(xn[:, t, :] @ wih_n.T + bih_n + h @ whh_n.T + bhh_n, 0.0)
    y_ref = h @ wfc_n.T + bfc_n

    assert y.shape == (batch, OUTPUT_DIM)
    err = np.max(np.abs(np.asarray(y, np.float64) - y_ref))
    assert np.allclose(np.asarray(y, np.float64), y_ref, atol=2e-3, rtol=2e-3), err

    print("KERNEL_OK")
</pallas_src>

<mosaic_0001>
module attributes {stable_mosaic.version = 11 : i64} {
  func.func @rnn_kernel(%arg0: memref<64x28xf32, #tpu.memory_space<vmem>>, %arg1: memref<28x128xf32, #tpu.memory_space<vmem>>, %arg2: memref<128x128xf32, #tpu.memory_space<vmem>>, %arg3: memref<1x128xf32, #tpu.memory_space<vmem>>, %arg4: memref<128x128xf32, #tpu.memory_space<vmem>>, %arg5: memref<1x128xf32, #tpu.memory_space<vmem>>, %arg6: memref<8x128xf32, #tpu.memory_space<vmem>>, %arg7: memref<64x128xf32, #tpu.memory_space<vmem>>) attributes {dimension_semantics = [], scalar_prefetch = 0 : i64, scratch_operands = 1 : i64, tpu.core_type = #tpu.core_type<tc>} {
    %c0 = arith.constant 0 : index
    %c0_0 = arith.constant 0 : index
    %0 = vector.load %arg0[%c0, %c0_0] : memref<64x28xf32, #tpu.memory_space<vmem>>, vector<64x28xf32>
    %c0_1 = arith.constant 0 : index
    %c0_2 = arith.constant 0 : index
    %1 = vector.load %arg1[%c0_1, %c0_2] : memref<28x128xf32, #tpu.memory_space<vmem>>, vector<28x128xf32>
    %cst = arith.constant dense<0.000000e+00> : vector<64x128xf32>
    %2 = tpu.matmul %0, %1, %cst {dimension_numbers = #tpu.dot_dimension_numbers<[1], [0], [0], [1], [0, 0, 1, 1], [], []>} : vector<64x28xf32>, vector<28x128xf32>, vector<64x128xf32> -> vector<64x128xf32>
    %c0_3 = arith.constant 0 : index
    %c0_4 = arith.constant 0 : index
    %3 = vector.load %arg3[%c0_3, %c0_4] : memref<1x128xf32, #tpu.memory_space<vmem>>, vector<1x128xf32>
    %4 = vector.broadcast %3 : vector<1x128xf32> to vector<64x128xf32>
    %5 = arith.addf %2, %4 : vector<64x128xf32>
    %c0_5 = arith.constant 0 : index
    %c0_6 = arith.constant 0 : index
    %6 = vector.load %arg7[%c0_5, %c0_6] : memref<64x128xf32, #tpu.memory_space<vmem>>, vector<64x128xf32>
    tpu.vector_store %arg7[%c0_5, %c0_6], %5 {strides = array<i32>} : memref<64x128xf32, #tpu.memory_space<vmem>>, vector<64x128xf32>,
    %c0_7 = arith.constant 0 : index
    %c0_8 = arith.constant 0 : index
    %7 = vector.load %arg2[%c0_7, %c0_8] : memref<128x128xf32, #tpu.memory_space<vmem>>, vector<128x128xf32>
    %cst_9 = arith.constant 0.000000e+00 : f32
    %8 = vector.broadcast %cst_9 : f32 to vector<8x128xf32>
    %c0_i32 = arith.constant 0 : i32
    %c8_i32 = arith.constant 8 : i32
    %9 = arith.muli %c0_i32, %c8_i32 : i32
    %10 = tpu.assume_multiple %9, 8 : i32
    %11 = arith.index_cast %10 : i32 to index
    %c0_10 = arith.constant 0 : index
    %12 = vector.load %arg7[%11, %c0_10] : memref<64x128xf32, #tpu.memory_space<vmem>>, vector<8x128xf32>
    %cst_11 = arith.constant dense<0.000000e+00> : vector<8x128xf32>
    %13 = tpu.matmul %8, %7, %cst_11 {dimension_numbers = #tpu.dot_dimension_numbers<[1], [0], [0], [1], [0, 0, 1, 1], [], []>} : vector<8x128xf32>, vector<128x128xf32>, vector<8x128xf32> -> vector<8x128xf32>
    %14 = arith.addf %12, %13 : vector<8x128xf32>
    %cst_12 = arith.constant 0.000000e+00 : f32
    %15 = vector.broadcast %cst_12 : f32 to vector<8x128xf32>
    %16 = arith.maximumf %14, %15 : vector<8x128xf32>
    %c1_i32 = arith.constant 1 : i32
    %c8_i32_13 = arith.constant 8 : i32
    %17 = arith.muli %c1_i32, %c8_i32_13 : i32
    %18 = tpu.assume_multiple %17, 8 : i32
    %19 = arith.index_cast %18 : i32 to index
    %c0_14 = arith.constant 0 : index
    %20 = vector.load %arg7[%19, %c0_14] : memref<64x128xf32, #tpu.memory_space<vmem>>, vector<8x128xf32>
    %cst_15 = arith.constant dense<0.000000e+00> : vector<8x128xf32>
    %21 = tpu.matmul %16, %7, %cst_15 {dimension_numbers = #tpu.dot_dimension_numbers<[1], [0], [0], [1], [0, 0, 1, 1], [], []>} : vector<8x128xf32>, vector<128x128xf32>, vector<8x128xf32> -> vector<8x128xf32>
    %22 = arith.addf %20, %21 : vector<8x128xf32>
    %cst_16 = arith.constant 0.000000e+00 : f32
    %23 = vector.broadcast %cst_16 : f32 to vector<8x128xf32>
    %24 = arith.maximumf %22, %23 : vector<8x128xf32>
    %c2_i32 = arith.constant 2 : i32
    %c8_i32_17 = arith.constant 8 : i32
    %25 = arith.muli %c2_i32, %c8_i32_17 : i32
    %26 = tpu.assume_multiple %25, 8 : i32
    %27 = arith.index_cast %26 : i32 to index
    %c0_18 = arith.constant 0 : index
    %28 = vector.load %arg7[%27, %c0_18] : memref<64x128xf32, #tpu.memory_space<vmem>>, vector<8x128xf32>
    %cst_19 = arith.constant dense<0.000000e+00> : vector<8x128xf32>
    %29 = tpu.matmul %24, %7, %cst_19 {dimension_numbers = #tpu.dot_dimension_numbers<[1], [0], [0], [1], [0, 0, 1, 1], [], []>} : vector<8x128xf32>, vector<128x128xf32>, vector<8x128xf32> -> vector<8x128xf32>
    %30 = arith.addf %28, %29 : vector<8x128xf32>
    %cst_20 = arith.constant 0.000000e+00 : f32
    %31 = vector.broadcast %cst_20 : f32 to vector<8x128xf32>
    %32 = arith.maximumf %30, %31 : vector<8x128xf32>
    %c3_i32 = arith.constant 3 : i32
    %c8_i32_21 = arith.constant 8 : i32
    %33 = arith.muli %c3_i32, %c8_i32_21 : i32
    %34 = tpu.assume_multiple %33, 8 : i32
    %35 = arith.index_cast %34 : i32 to index
    %c0_22 = arith.constant 0 : index
    %36 = vector.load %arg7[%35, %c0_22] : memref<64x128xf32, #tpu.memory_space<vmem>>, vector<8x128xf32>
    %cst_23 = arith.constant dense<0.000000e+00> : vector<8x128xf32>
    %37 = tpu.matmul %32, %7, %cst_23 {dimension_numbers = #tpu.dot_dimension_numbers<[1], [0], [0], [1], [0, 0, 1, 1], [], []>} : vector<8x128xf32>, vector<128x128xf32>, vector<8x128xf32> -> vector<8x128xf32>
    %38 = arith.addf %36, %37 : vector<8x128xf32>
    %cst_24 = arith.constant 0.000000e+00 : f32
    %39 = vector.broadcast %cst_24 : f32 to vector<8x128xf32>
    %40 = arith.maximumf %38, %39 : vector<8x128xf32>
    %c4_i32 = arith.constant 4 : i32
    %c8_i32_25 = arith.constant 8 : i32
    %41 = arith.muli %c4_i32, %c8_i32_25 : i32
    %42 = tpu.assume_multiple %41, 8 : i32
    %43 = arith.index_cast %42 : i32 to index
    %c0_26 = arith.constant 0 : index
    %44 = vector.load %arg7[%43, %c0_26] : memref<64x128xf32, #tpu.memory_space<vmem>>, vector<8x128xf32>
    %cst_27 = arith.constant dense<0.000000e+00> : vector<8x128xf32>
    %45 = tpu.matmul %40, %7, %cst_27 {dimension_numbers = #tpu.dot_dimension_numbers<[1], [0], [0], [1], [0, 0, 1, 1], [], []>} : vector<8x128xf32>, vector<128x128xf32>, vector<8x128xf32> -> vector<8x128xf32>
    %46 = arith.addf %44, %45 : vector<8x128xf32>
    %cst_28 = arith.constant 0.000000e+00 : f32
    %47 = vector.broadcast %cst_28 : f32 to vector<8x128xf32>
    %48 = arith.maximumf %46, %47 : vector<8x128xf32>
    %c5_i32 = arith.constant 5 : i32
    %c8_i32_29 = arith.constant 8 : i32
    %49 = arith.muli %c5_i32, %c8_i32_29 : i32
    %50 = tpu.assume_multiple %49, 8 : i32
    %51 = arith.index_cast %50 : i32 to index
    %c0_30 = arith.constant 0 : index
    %52 = vector.load %arg7[%51, %c0_30] : memref<64x128xf32, #tpu.memory_space<vmem>>, vector<8x128xf32>
    %cst_31 = arith.constant dense<0.000000e+00> : vector<8x128xf32>
    %53 = tpu.matmul %48, %7, %cst_31 {dimension_numbers = #tpu.dot_dimension_numbers<[1], [0], [0], [1], [0, 0, 1, 1], [], []>} : vector<8x128xf32>, vector<128x128xf32>, vector<8x128xf32> -> vector<8x128xf32>
    %54 = arith.addf %52, %53 : vector<8x128xf32>
    %cst_32 = arith.constant 0.000000e+00 : f32
    %55 = vector.broadcast %cst_32 : f32 to vector<8x128xf32>
    %56 = arith.maximumf %54, %55 : vector<8x128xf32>
    %c6_i32 = arith.constant 6 : i32
    %c8_i32_33 = arith.constant 8 : i32
    %57 = arith.muli %c6_i32, %c8_i32_33 : i32
    %58 = tpu.assume_multiple %57, 8 : i32
    %59 = arith.index_cast %58 : i32 to index
    %c0_34 = arith.constant 0 : index
    %60 = vector.load %arg7[%59, %c0_34] : memref<64x128xf32, #tpu.memory_space<vmem>>, vector<8x128xf32>
    %cst_35 = arith.constant dense<0.000000e+00> : vector<8x128xf32>
    %61 = tpu.matmul %56, %7, %cst_35 {dimension_numbers = #tpu.dot_dimension_numbers<[1], [0], [0], [1], [0, 0, 1, 1], [], []>} : vector<8x128xf32>, vector<128x128xf32>, vector<8x128xf32> -> vector<8x128xf32>
    %62 = arith.addf %60, %61 : vector<8x128xf32>
    %cst_36 = arith.constant 0.000000e+00 : f32
    %63 = vector.broadcast %cst_36 : f32 to vector<8x128xf32>
    %64 = arith.maximumf %62, %63 : vector<8x128xf32>
    %c7_i32 = arith.constant 7 : i32
    %c8_i32_37 = arith.constant 8 : i32
    %65 = arith.muli %c7_i32, %c8_i32_37 : i32
    %66 = tpu.assume_multiple %65, 8 : i32
    %67 = arith.index_cast %66 : i32 to index
    %c0_38 = arith.constant 0 : index
    %68 = vector.load %arg7[%67, %c0_38] : memref<64x128xf32, #tpu.memory_space<vmem>>, vector<8x128xf32>
    %cst_39 = arith.constant dense<0.000000e+00> : vector<8x128xf32>
    %69 = tpu.matmul %64, %7, %cst_39 {dimension_numbers = #tpu.dot_dimension_numbers<[1], [0], [0], [1], [0, 0, 1, 1], [], []>} : vector<8x128xf32>, vector<128x128xf32>, vector<8x128xf32> -> vector<8x128xf32>
    %70 = arith.addf %68, %69 : vector<8x128xf32>
    %cst_40 = arith.constant 0.000000e+00 : f32
    %71 = vector.broadcast %cst_40 : f32 to vector<8x128xf32>
    %72 = arith.maximumf %70, %71 : vector<8x128xf32>
    %c8_i32_41 = arith.constant 8 : i32
    %c0_42 = arith.constant 0 : index
    %c0_43 = arith.constant 0 : index
    %73 = vector.load %arg4[%c0_42, %c0_43] : memref<128x128xf32, #tpu.memory_space<vmem>>, vector<128x128xf32>
    %cst_44 = arith.constant dense<0.000000e+00> : vector<8x128xf32>
    %74 = tpu.matmul %72, %73, %cst_44 {dimension_numbers = #tpu.dot_dimension_numbers<[1], [0], [0], [1], [0, 0, 1, 1], [], []>} : vector<8x128xf32>, vector<128x128xf32>, vector<8x128xf32> -> vector<8x128xf32>
    %c0_45 = arith.constant 0 : index
    %c0_46 = arith.constant 0 : index
    %75 = vector.load %arg5[%c0_45, %c0_46] : memref<1x128xf32, #tpu.memory_space<vmem>>, vector<1x128xf32>
    %76 = vector.broadcast %75 : vector<1x128xf32> to vector<8x128xf32>
    %77 = arith.addf %74, %76 : vector<8x128xf32>
    %c0_47 = arith.constant 0 : index
    %c0_48 = arith.constant 0 : index
    %78 = vector.load %arg6[%c0_47, %c0_48] : memref<8x128xf32, #tpu.memory_space<vmem>>, vector<8x128xf32>
    tpu.vector_store %arg6[%c0_47, %c0_48], %77 {strides = array<i32>} : memref<8x128xf32, #tpu.memory_space<vmem>>, vector<8x128xf32>,
    return
  }
}

</mosaic_0001>

<bundles_post_ra>
// kernel: rnn_forward.1
= control target key start
LH: loop header
LB: loop body
LE: loop exit
PB: predicated region body
PF: predicated region fallthrough
CT: control target
= control target key end

     0   :  { %11 = vsyncpa [#allocation4], 0  ;;  %s2110_s0 = inlined_call_operand.vmem [shape: f32[64,28], index: 0, kind: input, shape index: {}]   ;;  %s2111_s1 = inlined_call_operand.hbm [shape: f32[28,128], index: 1, kind: input, shape index: {}]   ;;  %s2112_s2 = inlined_call_operand.vmem [shape: f32[128,128], index: 2, kind: input, shape index: {}]   ;;  %s2113_s3 = inlined_call_operand.vmem [shape: f32[1,128], index: 3, kind: input, shape index: {}]   ;;  %s2114_s4 = inlined_call_operand.hbm [shape: f32[128,128], index: 4, kind: input, shape index: {}]   ;;  %s2115_s5 = inlined_call_operand.vmem [shape: f32[1,128], index: 5, kind: input, shape index: {}]   ;;  %s2116_s6 = inlined_call_operand.hbm [shape: f32[8,128], index: 6, kind: output, shape index: {}]  }
   0x1   :  { %12 = vsyncpa [#allocation7], 0 }
   0x2   :  { %13 = vsyncpa [#allocation5], 0  ;;  %s1748_s21 = smov [#allocation3]   ;;  %s1676_s25 = scalar_lea.hbm %s2111_s1, 512 }
   0x3   :  { %s21_s22 = sshll.u32 %s1748_s21, 4  ;;  %p1677_p0 = scmp.ne.s32.totalorder %s2111_s1, %s1676_s25  ;;  %s22_s22 = int_to_ptr.vmem [resolvable:$true] %s21_s22 }
   0x4   :  { %p1680_p1 = scmp.lt.u32.totalorder %s1676_s25, %s2111_s1 }
   0x6   :  { %p1682_p2 = pnand %p1680_p1, %p1677_p0 }
   0x8   :  { %1685 = shalt.err (!%p1682_p2)
}
   0x9   :  { %s1686_s30 = scalar_lea.vmem %s22_s22, 512  ;;  %p1691_p4 = scmp.lt.s32.totalorder %s22_s22, %s22_s22 }
   0xa   :  { %p1687_p3 = scmp.ne.s32.totalorder %s22_s22, %s1686_s30  ;;  %p1692_p5 = scmp.lt.s32.totalorder %s1686_s30, %s1686_s30 }
   0xc   :  { %p1693_p6 = por %p1692_p5, %p1691_p4 }
   0xe   :  { %p1694_p7 = pnand %p1693_p6, %p1687_p3 }
  0x10   :  { %1697 = shalt.err (!%p1694_p7)
}
  0x11   :  { %s1749_s7 = smov 128   ;;  %s1750_s8 = smov 8  }
  0x12   :  { %27 = dma.hbm_to_vmem [thread:$0]  %s2111_s1, 512, %s22_s22, [#allocation4], %s1749_s7, %s1749_s7, %s1750_s8  }
  0x13   :  { %s1751_s11 = smov [#allocation6]   ;;  %s1698_s15 = scalar_lea.hbm %s2114_s4, 2048 }
  0x14   :  { %s37_s12 = sshll.u32 %s1751_s11, 4  ;;  %p1699_p8 = scmp.ne.s32.totalorder %s2114_s4, %s1698_s15  ;;  %s38_s12 = int_to_ptr.vmem [resolvable:$true] %s37_s12 }
  0x15   :  { %p1702_p9 = scmp.lt.u32.totalorder %s1698_s15, %s2114_s4 }
  0x17   :  { %p1704_p10 = pnand %p1702_p9, %p1699_p8 }
  0x19   :  { %1707 = shalt.err (!%p1704_p10)
}
  0x1a   :  { %s1708_s20 = scalar_lea.vmem %s38_s12, 2048  ;;  %p1713_p12 = scmp.lt.s32.totalorder %s38_s12, %s38_s12 }
  0x1b   :  { %p1709_p11 = scmp.ne.s32.totalorder %s38_s12, %s1708_s20  ;;  %p1714_p13 = scmp.lt.s32.totalorder %s1708_s20, %s1708_s20 }
  0x1d   :  { %p1715_p0 = por %p1714_p13, %p1713_p12 }
  0x1f   :  { %p1716_p1 = pnand %p1715_p0, %p1709_p11 }
  0x21   :  { %1719 = shalt.err (!%p1716_p1)
}
  0x22   :  { %43 = dma.hbm_to_vmem [thread:$0]  %s2114_s4, 2048, %s38_s12, [#allocation7], %s1749_s7, %s1749_s7, %s1750_s8  }
  0x23   :  { %1742 = dma.done.wait [#allocation4], 512  }
  0x24   :  { %1743 = vsyncadd [#allocation4], 4294966784 }
  0x25   :  { %1744 = dma.done.wait [#allocation7], 2048  }
  0x26   :  { %1745 = vsyncadd [#allocation7], 4294965248  ;;  %v1752_v0 = vmov 0.0|0.0   ;;  %vm1753_vm0 = vmmov 0   ;;  %v1754_v1 = vmov 0.0   ;;  %v213_v2 = vld [vmem:[%s2112_s2] sm:$0xff] }
  0x27   :  { %1451 = vmatprep.subr.bf16.mxu1 %v1752_v0  ;;  %1158 = vmatprep.mubr.msk.f32.mxu1 %vm1753_vm0, %v1754_v1  ;;  %v214_v3 = vld [vmem:[%s2112_s2 + $0x8] sm:$0xff]  ;;  %v215_v4 = vld [vmem:[%s2112_s2 + $0x10] sm:$0xff]  ;;  %v216_v6 = vld [vmem:[%s2112_s2 + $0x18] sm:$0xff]  ;;  %vm96_vm1 = vcmask 1043456   ;;  %vm1755_vm2 = vmmov 1   ;;  %vm71_vm4 = vcmask 228352  }
  0x28   :  { %v1828_v5 = vpack.c.bf16 %v214_v3, %v213_v2  ;;  %v1834_v7 = vpack.c.bf16 %v216_v6, %v215_v4  ;;  %v60_v8 = vld [vmem:[#allocation3] sm:$0xff]  ;;  %v61_v9 = vld [vmem:[#allocation3 + $0x8] sm:$0xff]  ;;  %v62_v13 = vld [vmem:[#allocation3 + $0x10] sm:$0xff]  ;;  %s1756_s20 = smov [#allocation8]  }
  0x29   :  { %v217_v10 = vld [vmem:[%s2112_s2 + $0x20] sm:$0xff]  ;;  %v218_v11 = vld [vmem:[%s2112_s2 + $0x28] sm:$0xff]  ;;  %v1441_v12 = vpack.c.bf16 %v61_v9, %v60_v8  ;;  %v63_v14 = vld [vmem:[#allocation3 + $0x18] sm:$0xf]  ;;  %s920_s1 = sshll.u32 %s1756_s20, 4  ;;  %s921_s1 = int_to_ptr.vmem [resolvable:$true] %s920_s1 }
  0x2a   :  { %1453 = vmatpush3.bf16.msra.mxu1 %v1828_v5  ;;  %vm1446_vm3 = vmpackc.low %vm96_vm1, %vm1755_vm2  ;;  %v1445_v15 = vpack.c.bf16 %v63_v14, %v62_v13  ;;  %v52_v16 = vld [vmem:[%s2110_s0] sm:$0xff]  ;;  %v1847_v17 = vpack.c.bf16 %v218_v11, %v217_v10  ;;  %v219_v18 = vld [vmem:[%s2112_s2 + $0x30] sm:$0xff]  ;;  %s1720_s21 = scalar_lea.vmem %s921_s1, 128  ;;  %p1725_p3 = scmp.lt.s32.totalorder %s921_s1, %s921_s1 }
  0x2b   :  { %1454 = vmatprep.subr.bf16.mxu1 %v1752_v0  ;;  %1442 = vmatprep.subr.bf16.mxu0 %v1441_v12  ;;  %v220_v19 = vld [vmem:[%s2112_s2 + $0x38] sm:$0xff]  ;;  %v53_v21 = vld [vmem:[%s2110_s0 + $0x8] sm:$0xff]  ;;  %v221_v22 = vld [vmem:[%s2112_s2 + $0x40] sm:$0xff]  ;;  %p1721_p2 = scmp.ne.s32.totalorder %s921_s1, %s1720_s21  ;;  %p1726_p4 = scmp.lt.s32.totalorder %s1720_s21, %s1720_s21 }
  0x2c   :  { %1444 = vmatpush3.bf16.msra.mxu0 %v1441_v12  ;;  %1114 = vmatprep.mubr.msk.f32.mxu0 %vm71_vm4, %v52_v16  ;;  %v1858_v20 = vpack.c.bf16 %v220_v19, %v219_v18  ;;  %v222_v23 = vld [vmem:[%s2112_s2 + $0x48] sm:$0xff]  ;;  %v54_v24 = vld [vmem:[%s2110_s0 + $0x10] sm:$0xff]  ;;  %v55_v26 = vld [vmem:[%s2110_s0 + $0x18] sm:$0xff] }
  0x2d   :  { %1447 = vmatprep.subr.msk.bf16.mxu0 %vm1446_vm3, %v1445_v15  ;;  %v1876_v25 = vpack.c.bf16 %v222_v23, %v221_v22  ;;  %v223_v27 = vld [vmem:[%s2112_s2 + $0x50] sm:$0xff]  ;;  %v224_v28 = vld [vmem:[%s2112_s2 + $0x58] sm:$0xff]  ;;  %v56_v29 = vld [vmem:[%s2110_s0 + $0x20] sm:$0xff]  ;;  %p1727_p5 = por %p1726_p4, %p1725_p3 }
  0x2e   :  { %1456 = vmatpush3.bf16.msra.mxu1 %v1834_v7  ;;  %v1896_v30 = vpack.c.bf16 %v224_v28, %v223_v27  ;;  %v225_v31 = vld [vmem:[%s2112_s2 + $0x60] sm:$0xff]  ;;  %v226_v32 = vld [vmem:[%s2112_s2 + $0x68] sm:$0xff]  ;;  %v227_v34 = vld [vmem:[%s2112_s2 + $0x70] sm:$0xff] }
  0x2f   :  { %1457 = vmatprep.subr.bf16.mxu1 %v1752_v0  ;;  %v1909_v33 = vpack.c.bf16 %v226_v32, %v225_v31  ;;  %v228_v35 = vld [vmem:[%s2112_s2 + $0x78] sm:$0xff]  ;;  %v57_v37 = vld [vmem:[%s2110_s0 + $0x28] sm:$0xff]  ;;  %v58_v38 = vld [vmem:[%s2110_s0 + $0x30] sm:$0xff]  ;;  %p1728_p6 = pnand %p1727_p5, %p1721_p2 }
  0x30   :  { %1450 = vmatpush3.bf16.msk.msra.mxu0 %vm1446_vm3, %v1445_v15  ;;  %v1921_v36 = vpack.c.bf16 %v228_v35, %v227_v34  ;;  %v59_v39 = vld [vmem:[%s2110_s0 + $0x38] sm:$0xff]  ;;  %v1974_v44 = vld [vmem:[%s2113_s3] ss:$0 sm:$0xff]  ;;  %v821_v18 = vld [vmem:[#allocation6 + $0x8] sm:$0xff] }
  0x31   :  { %1475 = vmatprep.subr.bf16.mxu0 %v1752_v0  ;;  %v822_v19 = vld [vmem:[#allocation6 + $0x10] sm:$0xff]  ;;  %v824_v23 = vld [vmem:[#allocation6 + $0x20] sm:$0xff]  ;;  %v827_v27 = vld [vmem:[#allocation6 + $0x38] sm:$0xff] }
  0x32   :  { %1459 = vmatpush3.bf16.msra.mxu1 %v1847_v17  ;;  %v830_v31 = vld [vmem:[#allocation6 + $0x50] sm:$0xff]  ;;  %v831_v32 = vld [vmem:[#allocation6 + $0x58] sm:$0xff]  ;;  %v832_v34 = vld [vmem:[#allocation6 + $0x60] sm:$0xff] }
  0x33   :  { %1460 = vmatprep.subr.bf16.mxu1 %v1752_v0  ;;  %1115 = vmatmul.mubr.msk.f32.vlgmr.msra.gmra.mrb[0].mxu0 %vm71_vm4, %v53_v21  ;;  %v823_v21 = vld [vmem:[#allocation6 + $0x18] sm:$0xff]  ;;  %v833_v35 = vld [vmem:[#allocation6 + $0x68] sm:$0xff] }
  0x34   :  { %1477 = vmatpush3.bf16.msra.mxu0 %v1828_v5  ;;  %1117 = vmatprep.mubr.msk.f32.mxu0 %vm71_vm4, %v54_v24  ;;  %v1647_v22 = vpack.c.bf16 %v823_v21, %v822_v19  ;;  %v825_v24 = vld [vmem:[#allocation6 + $0x28] sm:$0xff] }
  0x35   :  { %1478 = vmatprep.subr.bf16.mxu0 %v1752_v0 }
  0x36   :  { %1462 = vmatpush3.bf16.msra.mxu1 %v1858_v20 }
  0x37   :  { %1463 = vmatprep.subr.bf16.mxu1 %v1752_v0  ;;  %1118 = vmatmul.mubr.msk.f32.gmra.mrb[2].mxu0 %vm71_vm4, %v55_v26  ;;  %v826_v26 = vld [vmem:[#allocation6 + $0x30] sm:$0xff] }
  0x38   :  { %1480 = vmatpush3.bf16.msra.mxu0 %v1834_v7  ;;  %1120 = vmatprep.mubr.msk.f32.mxu0 %vm71_vm4, %v56_v29  ;;  %v1653_v28 = vpack.c.bf16 %v827_v27, %v826_v26  ;;  %v829_v29 = vld [vmem:[#allocation6 + $0x48] sm:$0xff] }
  0x39   :  { %1481 = vmatprep.subr.bf16.mxu0 %v1752_v0 }
  0x3a   :  { %1465 = vmatpush3.bf16.msra.mxu1 %v1876_v25 }
  0x3b   :  { %1466 = vmatprep.subr.bf16.mxu1 %v1752_v0  ;;  %1121 = vmatmul.mubr.msk.f32.gmra.mrb[4].mxu0 %vm71_vm4, %v57_v37 }
  0x3c   :  { %1483 = vmatpush3.bf16.msra.mxu0 %v1847_v17  ;;  %1123 = vmatprep.mubr.msk.f32.mxu0 %vm71_vm4, %v58_v38 }
  0x3d   :  { %1484 = vmatprep.subr.bf16.mxu0 %v1752_v0 }
  0x3e   :  { %1468 = vmatpush3.bf16.msra.mxu1 %v1896_v30 }
  0x3f   :  { %1469 = vmatprep.subr.bf16.mxu1 %v1752_v0  ;;  %1124 = vmatmul.mubr.msk.f32.gmra.mrb[6].mxu0 %vm71_vm4, %v59_v39 }
  0x40   :  { %1486 = vmatpush3.bf16.msra.mxu0 %v1858_v20  ;;  %1193 = vmatprep.mubr.msk.f32.mxu0 %vm1753_vm0, %v1754_v1 }
  0x41   :  { %1487 = vmatprep.subr.bf16.mxu0 %v1752_v0 }
  0x42   :  { %1471 = vmatpush3.bf16.msra.mxu1 %v1909_v33 }
  0x43   :  { %1472 = vmatprep.subr.bf16.mxu1 %v1752_v0 }
  0x44   :  { %1489 = vmatpush3.bf16.msra.mxu0 %v1876_v25 }
  0x45   :  { %1490 = vmatprep.subr.bf16.mxu0 %v1752_v0 }
  0x46   :  { %1474 = vmatpush3.bf16.msra.mxu1 %v1921_v36 }
  0x47   :  { %1499 = vmatprep.subr.bf16.mxu1 %v1752_v0 }
  0x48   :  { %1492 = vmatpush3.bf16.msra.mxu0 %v1896_v30 }
  0x49   :  { %1159 = vmatmul.mubr.f32.vlgmr.msra.gmra.mrb[0].mxu1 %v1754_v1  ;;  %1493 = vmatprep.subr.bf16.mxu0 %v1752_v0 }
  0x4a   :  { %1501 = vmatpush3.bf16.msra.mxu1 %v1828_v5  ;;  %1228 = vmatprep.mubr.msk.f32.mxu1 %vm1753_vm0, %v1754_v1 }
  0x4b   :  { %1502 = vmatprep.subr.bf16.mxu1 %v1752_v0 }
  0x4c   :  { %1495 = vmatpush3.bf16.msra.mxu0 %v1909_v33 }
  0x4d   :  { %1496 = vmatprep.subr.bf16.mxu0 %v1752_v0 }
  0x4e   :  { %1504 = vmatpush3.bf16.msra.mxu1 %v1834_v7 }
  0x4f   :  { %1505 = vmatprep.subr.bf16.mxu1 %v1752_v0 }
  0x50   :  { %1498 = vmatpush3.bf16.msra.mxu0 %v1921_v36 }
  0x51   :  { %1523 = vmatprep.subr.bf16.mxu0 %v1752_v0 }
  0x52   :  { %1507 = vmatpush3.bf16.msra.mxu1 %v1847_v17 }
  0x53   :  { %1508 = vmatprep.subr.bf16.mxu1 %v1752_v0 }
  0x56   :  { %1510 = vmatpush3.bf16.msra.mxu1 %v1858_v20 }
  0x57   :  { %1511 = vmatprep.subr.bf16.mxu1 %v1752_v0 }
  0x5a   :  { %1513 = vmatpush3.bf16.msra.mxu1 %v1876_v25 }
  0x5b   :  { %1514 = vmatprep.subr.bf16.mxu1 %v1752_v0 }
  0x5e   :  { %1516 = vmatpush3.bf16.msra.mxu1 %v1896_v30 }
  0x5f   :  { %1517 = vmatprep.subr.bf16.mxu1 %v1752_v0 }
  0x62   :  { %1519 = vmatpush3.bf16.msra.mxu1 %v1909_v33 }
  0x63   :  { %1520 = vmatprep.subr.bf16.mxu1 %v1752_v0 }
  0x66   :  { %1522 = vmatpush3.bf16.msra.mxu1 %v1921_v36 }
  0x67   :  { %1547 = vmatprep.subr.bf16.mxu1 %v1752_v0 }
 0x106   :  { %v1116_v40 = vpop.f32.mrb[0].mxu0 }
 0x107   :  { %v166_v41 = vpop.f32.mrb[1].mxu0  ;;  %v172_v54 = vadd.f32 %v1116_v40, %v1974_v44 }
 0x108   :  { %v167_v45 = vadd.f32 %v1974_v44, %v166_v41 }
 0x10a   :  { %v1969_v42 = vpop.f32.mrb[2].mxu0 }
 0x10b   :  { %v176_v43 = vpop.f32.mrb[3].mxu0  ;;  %v182_v2 = vadd.f32 %v1969_v42, %v1974_v44  ;;  %v834_v42 = vld [vmem:[#allocation6 + $0x70] sm:$0xff] }
 0x10c   :  { %v177_v59 = vadd.f32 %v1974_v44, %v176_v43  ;;  %v835_v43 = vld [vmem:[#allocation6 + $0x78] sm:$0xff] }
 0x10e   :  { %v1995_v50 = vpop.f32.mrb[4].mxu0 }
 0x10f   :  { %v1997_v51 = vpop.f32.mrb[5].mxu0 }
 0x110   :  { %v187_v9 = vadd.f32 %v1974_v44, %v1997_v51 }
 0x112   :  { %v1999_v52 = vpop.f32.mrb[6].mxu0 }
 0x113   :  { %v2001_v53 = vpop.f32.mrb[7].mxu0 }
 0x114   :  { %v197_v37 = vadd.f32 %v1974_v44, %v2001_v53 }
 0x11c   :  { %v296_v46 = vpop.f32.mrb[0].mxu1 }
 0x11d   :  { %v300_v47 = vadd.f32 %v296_v46, %v167_v45  ;;  %v1160_v48 = vpop.f32.mrb[1].mxu1  ;;  %v1665_v45 = vpack.c.bf16 %v835_v43, %v834_v42  ;;  %v202_v46 = vadd.f32 %v1999_v52, %v1974_v44 }
 0x11f   :  { %v301_v49 = vmax.f32 %v300_v47, 0.0 }
 0x121   :  { %1194 = vmatmul.mubr.f32.vlgmr.msra.gmra.mrb[8].mxu0 %v301_v49 }
 0x122   :  { %1525 = vmatpush3.bf16.msra.mxu0 %v1828_v5  ;;  %1263 = vmatprep.mubr.msk.f32.mxu0 %vm1753_vm0, %v1754_v1 }
 0x123   :  { %1526 = vmatprep.subr.bf16.mxu0 %v1752_v0 }
 0x126   :  { %1528 = vmatpush3.bf16.msra.mxu0 %v1834_v7 }
 0x127   :  { %1529 = vmatprep.subr.bf16.mxu0 %v1752_v0 }
 0x12a   :  { %1531 = vmatpush3.bf16.msra.mxu0 %v1847_v17 }
 0x12b   :  { %1532 = vmatprep.subr.bf16.mxu0 %v1752_v0 }
 0x12e   :  { %1534 = vmatpush3.bf16.msra.mxu0 %v1858_v20 }
 0x12f   :  { %1535 = vmatprep.subr.bf16.mxu0 %v1752_v0 }
 0x132   :  { %1537 = vmatpush3.bf16.msra.mxu0 %v1876_v25 }
 0x133   :  { %1538 = vmatprep.subr.bf16.mxu0 %v1752_v0 }
 0x136   :  { %1540 = vmatpush3.bf16.msra.mxu0 %v1896_v30 }
 0x137   :  { %1541 = vmatprep.subr.bf16.mxu0 %v1752_v0 }
 0x13a   :  { %1543 = vmatpush3.bf16.msra.mxu0 %v1909_v33 }
 0x13b   :  { %1544 = vmatprep.subr.bf16.mxu0 %v1752_v0 }
 0x13e   :  { %1546 = vmatpush3.bf16.msra.mxu0 %v1921_v36 }
 0x13f   :  { %1571 = vmatprep.subr.bf16.mxu0 %v1752_v0 }
 0x1f4   :  { %v370_v55 = vpop.f32.mrb[8].mxu0 }
 0x1f5   :  { %v374_v56 = vadd.f32 %v370_v55, %v172_v54  ;;  %v1195_v57 = vpop.f32.mrb[9].mxu0 }
 0x1f7   :  { %v375_v58 = vmax.f32 %v374_v56, 0.0 }
 0x1f9   :  { %1229 = vmatmul.mubr.f32.vlgmr.msra.gmra.mrb[2].mxu1 %v375_v58 }
 0x1fa   :  { %1549 = vmatpush3.bf16.msra.mxu1 %v1828_v5  ;;  %1298 = vmatprep.mubr.msk.f32.mxu1 %vm1753_vm0, %v1754_v1 }
 0x1fb   :  { %1550 = vmatprep.subr.bf16.mxu1 %v1752_v0 }
 0x1fe   :  { %1552 = vmatpush3.bf16.msra.mxu1 %v1834_v7 }
 0x1ff   :  { %1553 = vmatprep.subr.bf16.mxu1 %v1752_v0 }
 0x202   :  { %1555 = vmatpush3.bf16.msra.mxu1 %v1847_v17 }
 0x203   :  { %1556 = vmatprep.subr.bf16.mxu1 %v1752_v0 }
 0x206   :  { %1558 = vmatpush3.bf16.msra.mxu1 %v1858_v20 }
 0x207   :  { %1559 = vmatprep.subr.bf16.mxu1 %v1752_v0 }
 0x20a   :  { %1561 = vmatpush3.bf16.msra.mxu1 %v1876_v25 }
 0x20b   :  { %1562 = vmatprep.subr.bf16.mxu1 %v1752_v0 }
 0x20e   :  { %1564 = vmatpush3.bf16.msra.mxu1 %v1896_v30 }
 0x20f   :  { %1565 = vmatprep.subr.bf16.mxu1 %v1752_v0 }
 0x212   :  { %1567 = vmatpush3.bf16.msra.mxu1 %v1909_v33 }
 0x213   :  { %1568 = vmatprep.subr.bf16.mxu1 %v1752_v0 }
 0x216   :  { %1570 = vmatpush3.bf16.msra.mxu1 %v1921_v36 }
 0x217   :  { %1595 = vmatprep.subr.bf16.mxu1 %v1752_v0 }
 0x2cc   :  { %v444_v60 = vpop.f32.mrb[2].mxu1 }
 0x2cd   :  { %v448_v61 = vadd.f32 %v444_v60, %v177_v59  ;;  %v1230_v62 = vpop.f32.mrb[3].mxu1 }
 0x2cf   :  { %v449_v63 = vmax.f32 %v448_v61, 0.0 }
 0x2d1   :  { %1264 = vmatmul.mubr.f32.vlgmr.msra.gmra.mrb[10].mxu0 %v449_v63 }
 0x2d2   :  { %1573 = vmatpush3.bf16.msra.mxu0 %v1828_v5  ;;  %1333 = vmatprep.mubr.msk.f32.mxu0 %vm1753_vm0, %v1754_v1 }
 0x2d3   :  { %1574 = vmatprep.subr.bf16.mxu0 %v1752_v0 }
 0x2d6   :  { %1576 = vmatpush3.bf16.msra.mxu0 %v1834_v7 }
 0x2d7   :  { %1577 = vmatprep.subr.bf16.mxu0 %v1752_v0 }
 0x2da   :  { %1579 = vmatpush3.bf16.msra.mxu0 %v1847_v17 }
 0x2db   :  { %1580 = vmatprep.subr.bf16.mxu0 %v1752_v0 }
 0x2de   :  { %1582 = vmatpush3.bf16.msra.mxu0 %v1858_v20 }
 0x2df   :  { %1583 = vmatprep.subr.bf16.mxu0 %v1752_v0 }
 0x2e2   :  { %1585 = vmatpush3.bf16.msra.mxu0 %v1876_v25 }
 0x2e3   :  { %1586 = vmatprep.subr.bf16.mxu0 %v1752_v0 }
 0x2e6   :  { %1588 = vmatpush3.bf16.msra.mxu0 %v1896_v30 }
 0x2e7   :  { %1589 = vmatprep.subr.bf16.mxu0 %v1752_v0 }
 0x2ea   :  { %1591 = vmatpush3.bf16.msra.mxu0 %v1909_v33 }
 0x2eb   :  { %1592 = vmatprep.subr.bf16.mxu0 %v1752_v0 }
 0x2ee   :  { %1594 = vmatpush3.bf16.msra.mxu0 %v1921_v36 }
 0x2ef   :  { %1619 = vmatprep.subr.bf16.mxu0 %v1752_v0 }
 0x3a4   :  { %v518_v3 = vpop.f32.mrb[10].mxu0 }
 0x3a5   :  { %v522_v4 = vadd.f32 %v518_v3, %v182_v2  ;;  %v1265_v6 = vpop.f32.mrb[11].mxu0 }
 0x3a7   :  { %v523_v8 = vmax.f32 %v522_v4, 0.0 }
 0x3a9   :  { %1299 = vmatmul.mubr.f32.vlgmr.msra.gmra.mrb[4].mxu1 %v523_v8 }
 0x3aa   :  { %1597 = vmatpush3.bf16.msra.mxu1 %v1828_v5  ;;  %1368 = vmatprep.mubr.msk.f32.mxu1 %vm1753_vm0, %v1754_v1 }
 0x3ab   :  { %1598 = vmatprep.subr.bf16.mxu1 %v1752_v0 }
 0x3ae   :  { %1600 = vmatpush3.bf16.msra.mxu1 %v1834_v7 }
 0x3af   :  { %1601 = vmatprep.subr.bf16.mxu1 %v1752_v0 }
 0x3b2   :  { %1603 = vmatpush3.bf16.msra.mxu1 %v1847_v17 }
 0x3b3   :  { %1604 = vmatprep.subr.bf16.mxu1 %v1752_v0 }
 0x3b6   :  { %1606 = vmatpush3.bf16.msra.mxu1 %v1858_v20 }
 0x3b7   :  { %1607 = vmatprep.subr.bf16.mxu1 %v1752_v0 }
 0x3ba   :  { %1609 = vmatpush3.bf16.msra.mxu1 %v1876_v25 }
 0x3bb   :  { %1610 = vmatprep.subr.bf16.mxu1 %v1752_v0 }
 0x3be   :  { %1612 = vmatpush3.bf16.msra.mxu1 %v1896_v30 }
 0x3bf   :  { %1613 = vmatprep.subr.bf16.mxu1 %v1752_v0 }
 0x3c2   :  { %1615 = vmatpush3.bf16.msra.mxu1 %v1909_v33 }
 0x3c3   :  { %1616 = vmatprep.subr.bf16.mxu1 %v1752_v0 }
 0x3c6   :  { %1618 = vmatpush3.bf16.msra.mxu1 %v1921_v36 }
 0x3c7   :  { %1643 = vmatprep.subr.bf16.mxu1 %v1752_v0 }
 0x47c   :  { %v592_v10 = vpop.f32.mrb[4].mxu1 }
 0x47d   :  { %v596_v11 = vadd.f32 %v592_v10, %v187_v9  ;;  %v1300_v12 = vpop.f32.mrb[5].mxu1 }
 0x47f   :  { %v597_v13 = vmax.f32 %v596_v11, 0.0 }
 0x481   :  { %1334 = vmatmul.mubr.f32.vlgmr.msra.gmra.mrb[12].mxu0 %v597_v13 }
 0x482   :  { %1621 = vmatpush3.bf16.msra.mxu0 %v1828_v5  ;;  %1403 = vmatprep.mubr.msk.f32.mxu0 %vm1753_vm0, %v1754_v1  ;;  %v192_v5 = vadd.f32 %v1995_v50, %v1974_v44 }
 0x483   :  { %1622 = vmatprep.subr.bf16.mxu0 %v1752_v0 }
 0x486   :  { %1624 = vmatpush3.bf16.msra.mxu0 %v1834_v7 }
 0x487   :  { %1625 = vmatprep.subr.bf16.mxu0 %v1752_v0 }
 0x48a   :  { %1627 = vmatpush3.bf16.msra.mxu0 %v1847_v17  ;;  %v820_v17 = vld [vmem:[#allocation6] sm:$0xff] }
 0x48b   :  { %1628 = vmatprep.subr.bf16.mxu0 %v1752_v0 }
 0x48e   :  { %1630 = vmatpush3.bf16.msra.mxu0 %v1858_v20  ;;  %v1644_v20 = vpack.c.bf16 %v821_v18, %v820_v17 }
 0x48f   :  { %1631 = vmatprep.subr.bf16.mxu0 %v1752_v0 }
 0x492   :  { %1633 = vmatpush3.bf16.msra.mxu0 %v1876_v25  ;;  %v1650_v25 = vpack.c.bf16 %v825_v24, %v824_v23 }
 0x493   :  { %1634 = vmatprep.subr.bf16.mxu0 %v1752_v0 }
 0x496   :  { %1636 = vmatpush3.bf16.msra.mxu0 %v1896_v30 }
 0x497   :  { %1637 = vmatprep.subr.bf16.mxu0 %v1752_v0 }
 0x49a   :  { %1639 = vmatpush3.bf16.msra.mxu0 %v1909_v33  ;;  %v1659_v33 = vpack.c.bf16 %v831_v32, %v830_v31 }
 0x49b   :  { %1640 = vmatprep.subr.bf16.mxu0 %v1752_v0 }
 0x49e   :  { %1642 = vmatpush3.bf16.msra.mxu0 %v1921_v36  ;;  %v1662_v36 = vpack.c.bf16 %v833_v35, %v832_v34 }
 0x554   :  { %v666_v7 = vpop.f32.mrb[12].mxu0 }
 0x555   :  { %v670_v14 = vadd.f32 %v666_v7, %v192_v5  ;;  %v1335_v15 = vpop.f32.mrb[13].mxu0 }
 0x557   :  { %v671_v16 = vmax.f32 %v670_v14, 0.0 }
 0x559   :  { %1369 = vmatmul.mubr.f32.vlgmr.msra.gmra.mrb[6].mxu1 %v671_v16 }
 0x55a   :  { %1438 = vmatprep.mubr.msk.f32.mxu1 %vm1753_vm0, %v1754_v1  ;;  %1645 = vmatpush3.bf16.msra.mxu1 %v1644_v20  ;;  %v828_v1 = vld [vmem:[#allocation6 + $0x40] sm:$0xff] }
 0x55b   :  { %1646 = vmatprep.subr.bf16.mxu1 %v1752_v0  ;;  %v1656_v30 = vpack.c.bf16 %v829_v29, %v828_v1 }
 0x55e   :  { %1648 = vmatpush3.bf16.msra.mxu1 %v1647_v22 }
 0x55f   :  { %1649 = vmatprep.subr.bf16.mxu1 %v1752_v0 }
 0x562   :  { %1651 = vmatpush3.bf16.msra.mxu1 %v1650_v25 }
 0x563   :  { %1652 = vmatprep.subr.bf16.mxu1 %v1752_v0 }
 0x566   :  { %1654 = vmatpush3.bf16.msra.mxu1 %v1653_v28 }
 0x567   :  { %1655 = vmatprep.subr.bf16.mxu1 %v1752_v0 }
 0x56a   :  { %1657 = vmatpush3.bf16.msra.mxu1 %v1656_v30 }
 0x56b   :  { %1658 = vmatprep.subr.bf16.mxu1 %v1752_v0 }
 0x56e   :  { %1660 = vmatpush3.bf16.msra.mxu1 %v1659_v33 }
 0x56f   :  { %1661 = vmatprep.subr.bf16.mxu1 %v1752_v0 }
 0x572   :  { %1663 = vmatpush3.bf16.msra.mxu1 %v1662_v36 }
 0x573   :  { %1664 = vmatprep.subr.bf16.mxu1 %v1752_v0  ;;  %v940_v0 = vld [vmem:[%s2115_s5] ss:$0 sm:$0xff] }
 0x576   :  { %1666 = vmatpush3.bf16.msra.mxu1 %v1665_v45 }
 0x62c   :  { %v740_v38 = vpop.f32.mrb[6].mxu1 }
 0x62d   :  { %v744_v39 = vadd.f32 %v740_v38, %v197_v37  ;;  %v1370_v40 = vpop.f32.mrb[7].mxu1 }
 0x62f   :  { %v745_v41 = vmax.f32 %v744_v39, 0.0 }
 0x631   :  { %1404 = vmatmul.mubr.f32.vlgmr.msra.gmra.mrb[14].mxu0 %v745_v41 }
 0x704   :  { %v814_v47 = vpop.f32.mrb[14].mxu0 }
 0x705   :  { %v818_v48 = vadd.f32 %v814_v47, %v202_v46  ;;  %v1405_v49 = vpop.f32.mrb[15].mxu0 }
 0x707   :  { %v819_v50 = vmax.f32 %v818_v48, 0.0 }
 0x709   :  { %1439 = vmatmul.mubr.f32.vlgmr.msra.gmra.mrb[8].mxu1 %v819_v50 }
 0x7dc   :  { %v909_v51 = vpop.f32.mrb[8].mxu1 }
 0x7dd   :  { %v910_v53 = vadd.f32 %v940_v0, %v909_v51  ;;  %v1440_v54 = vpop.f32.mrb[9].mxu1 }
 0x7df   :  { %913 = vst [vmem:[#allocation8] sm:$0xff] %v910_v53 }
 0x7e0   :  { %1731 = shalt.err (!%p1728_p6)
}
 0x7e1   :  { %s1732_s24 = scalar_lea.hbm %s2116_s6, 128 }
 0x7e2   :  { %p1733_p7 = scmp.ne.s32.totalorder %s2116_s6, %s1732_s24  ;;  %p1736_p8 = scmp.lt.u32.totalorder %s1732_s24, %s2116_s6 }
 0x7e4   :  { %p1738_p9 = pnand %p1736_p8, %p1733_p7 }
 0x7e6   :  { %1741 = shalt.err (!%p1738_p9)
}
 0x7e7   :  { %923 = dma.vmem_to_hbm [thread:$0]  %s921_s1, 128, %s2116_s6, [#allocation5]  }
 0x7e8   :  { %1746 = dma.done.wait [#allocation5], 128  }
 0x7e9   :  { %1747 = vsyncadd [#allocation5], 4294967168 }
 0x7ea   :  { %927 = vsyncpa [#allocation4], 1 }
 0x7eb   :  { %928 = vsyncpa [#allocation7], 1 }
 0x7ec   :  { %929 = vsyncpa [#allocation5], 1 }

</bundles_post_ra>
